<compile_context>
chip_gen: v5e
topology: v5e:2x2
jax: 0.10.0
libtpu: 0.0.40
codegen_flags: <defaults>
</compile_context>

<pallas_src>
import math
import functools

import jax
import jax.numpy as jnp
from jax.experimental import pallas as pl
from jax.experimental.pallas import tpu as pltpu


_LANE = 128


def _sublane_quantum(itemsize: int) -> int:
    return {4: 8, 2: 16, 1: 32}.get(itemsize, 8)


def _round_up(x: int, m: int) -> int:
    return ((x + m - 1) // m) * m


def make_positional_encoding_table(d_model: int, max_len: int = 5000,
                                   dtype=jnp.float32) -> jnp.ndarray:
    """Deterministic sinusoidal table, identical to the PyTorch __init__.

    Built once, already in the model dtype (avoids a per-forward cast op)."""
    position = jnp.arange(0, max_len, dtype=jnp.float32)[:, None]            # (max_len, 1)
    div_term = jnp.exp(
        jnp.arange(0, d_model, 2, dtype=jnp.float32) * (-math.log(10000.0) / d_model)
    )                                                                         # (d_model/2,)
    angles = position * div_term                                              # (max_len, d_model/2)
    pe = jnp.zeros((max_len, d_model), dtype=jnp.float32)
    pe = pe.at[:, 0::2].set(jnp.sin(angles))
    pe = pe.at[:, 1::2].set(jnp.cos(angles))
    # pe.unsqueeze(0).transpose(0, 1) -> (max_len, 1, d_model)
    return pe[:, None, :].astype(dtype)


# ---------------------------------------------------------------------------
# Kernels
# ---------------------------------------------------------------------------

def _pe_add_kernel(x_ref, pe_ref, o_ref):
    # x_ref: (tS, B, D), pe_ref: (tS, 1, D) -> VPU broadcast over the batch axis
    # (size-1 sublane dim lowers to a cheap stride-0 style broadcast).
    o_ref[...] = x_ref[...] + pe_ref[...]


def _dropout_threshold(p: float) -> jnp.uint32:
    # Integer-domain keep decision: drop iff bits < p * 2^32 (no u32->f32
    # convert, no signed-bits hazard).
    return jnp.uint32(min(int(p * 4294967296.0), 0xFFFFFFFF))


def _pe_add_dropout_hwprng_kernel(seed_ref, x_ref, pe_ref, o_ref, *, p: float):
    """Training dropout using the TPU hardware PRNG (TPU backend only)."""
    y = x_ref[...] + pe_ref[...]

    # Per-tile seed, mixed with an odd constant so adjacent tiles decorrelate.
    pltpu.prng_seed(seed_ref[0] + pl.program_id(0) * jnp.int32(7919))
    bits = pltpu.prng_random_bits(y.shape)
    if bits.dtype != jnp.uint32:                       # guard against int32 bits
        bits = pltpu.bitcast(bits, jnp.uint32)

    keep = bits >= _dropout_threshold(p)
    scale = jnp.asarray(1.0 / (1.0 - p), dtype=y.dtype)   # stay in x.dtype (lean VALU)
    o_ref[...] = jnp.where(keep, y * scale, jnp.zeros_like(y))


def _pe_add_dropout_bits_kernel(x_ref, pe_ref, bits_ref, o_ref, *, p: float):
    """Portable training dropout: uniform uint32 bits streamed in as an input."""
    y = x_ref[...] + pe_ref[...]
    keep = bits_ref[...] >= _dropout_threshold(p)
    scale = jnp.asarray(1.0 / (1.0 - p), dtype=y.dtype)
    o_ref[...] = jnp.where(keep, y * scale, jnp.zeros_like(y))


# ---------------------------------------------------------------------------
# Tiling helpers (padding-aware, generation-aware)
# ---------------------------------------------------------------------------

def _padded_block_bytes(ts: int, b: int, d: int, itemsize: int) -> int:
    """VMEM bytes of a (ts, b, d) block after (sublane, lane) tiling/padding."""
    return ts * _round_up(max(b, 1), _sublane_quantum(itemsize)) * _round_up(d, _LANE) * itemsize


def _tile_target_bytes() -> int:
    """Target padded bytes for one x block, by chip generation."""
    if jax.default_backend() != "tpu":
        return 2 << 20                                   # interpret / CPU: keep small
    try:
        vmem = int(pltpu.get_tpu_info().vmem_capacity_bytes)
    except Exception:
        vmem = 128 << 20
    # v7x-class (64 MiB VMEM, ~3.2 TB/s HBM): big tiles amortize the ~0.35 us
    # per-grid-step overhead.  v5e/v6e (128 MiB VMEM): 4 MiB is already <10%.
    return (8 << 20) if vmem <= (64 << 20) else (4 << 20)


def _pick_tile_s(S: int, B: int, D: int, itemsize: int, target_bytes: int) -> int:
    """Largest S-tile whose padded (tS, B, D) block is ~target_bytes,
    preferring a tile that divides S (no ragged tail block)."""
    row_bytes = _padded_block_bytes(1, B, D, itemsize)
    rows = int(max(1, min(S, target_bytes // row_bytes)))
    if rows < S and S % rows != 0:
        lo = max(1, rows // 2, rows - 4096)
        for cand in range(rows, lo, -1):
            if S % cand == 0:
                return cand
    return rows


# ---------------------------------------------------------------------------
# Wrapper
# ---------------------------------------------------------------------------

def positional_encoding(x, pe_table, *, p: float = 0.1,
                        training: bool = False, seed: int = 0):
    """x: (S, B, D). Returns (S, B, D) of x.dtype (same semantics as the module)."""
    S, B, D = x.shape
    assert pe_table.ndim == 3 and pe_table.shape[1] == 1 and pe_table.shape[2] == D
    assert pe_table.shape[0] >= S, "pe table shorter than sequence"
    assert 0.0 <= p < 1.0, "dropout p must be in [0, 1)"
    if pe_table.dtype != x.dtype:
        # Slow path — build the table in the model dtype at init to avoid this.
        pe_table = pe_table.astype(x.dtype)

    itemsize = jnp.dtype(x.dtype).itemsize
    tS = _pick_tile_s(S, B, D, itemsize, _tile_target_bytes())
    grid = (pl.cdiv(S, tS),)

    use_hw_prng = training and p > 0.0 and jax.default_backend() == "tpu"
    needs_bits = training and p > 0.0 and not use_hw_prng

    # Padded residency: double-buffered x-in, out, pe (+ bits in the fallback).
    x_block = _padded_block_bytes(tS, B, D, itemsize)
    pe_block = _padded_block_bytes(tS, 1, D, itemsize)
    bits_block = _padded_block_bytes(tS, B, D, 4) if needs_bits else 0
    resident = 2 * (2 * x_block + pe_block + bits_block)
    vmem_limit = max(32 << 20, min(int(resident * 1.4) + (2 << 20), 48 << 20))

    cparams = pltpu.CompilerParams(
        dimension_semantics=("parallel",),
        vmem_limit_bytes=vmem_limit,
    )

    out_shape = jax.ShapeDtypeStruct((S, B, D), x.dtype)
    # index_maps: `*_` absorbs the scalar-prefetch ref in the hw-prng branch.
    x_spec = pl.BlockSpec((tS, B, D), lambda s, *_: (s, 0, 0))
    pe_spec = pl.BlockSpec((tS, 1, D), lambda s, *_: (s, 0, 0))
    o_spec = pl.BlockSpec((tS, B, D), lambda s, *_: (s, 0, 0))

    if (not training) or p == 0.0:
        # Eval mode: nn.Dropout is the identity.
        return pl.pallas_call(
            _pe_add_kernel,
            out_shape=out_shape,
            grid_spec=pltpu.PrefetchScalarGridSpec(
                num_scalar_prefetch=0, grid=grid,
                in_specs=[x_spec, pe_spec], out_specs=o_spec),
            compiler_params=cparams,
            input_output_aliases={0: 0},                 # in-place add into x
        )(x, pe_table)

    if use_hw_prng:
        # Training on TPU: dropout via in-kernel hardware PRNG (mask semantics
        # match PyTorch; the random stream differs bitwise from torch's RNG).
        seed_arr = jnp.asarray([seed], dtype=jnp.int32)
        return pl.pallas_call(
            functools.partial(_pe_add_dropout_hwprng_kernel, p=p),
            out_shape=out_shape,
            grid_spec=pltpu.PrefetchScalarGridSpec(
                num_scalar_prefetch=1, grid=grid,
                in_specs=[x_spec, pe_spec], out_specs=o_spec),
            compiler_params=cparams,
            input_output_aliases={1: 0},                 # x (input idx 1, after seed) -> out
        )(seed_arr, x, pe_table)

    # Portable fallback (CPU / interpret mode): precomputed uniform bits.
    bits = jax.random.bits(jax.random.PRNGKey(seed), (S, B, D), jnp.uint32)
    bits_spec = pl.BlockSpec((tS, B, D), lambda s, *_: (s, 0, 0))
    return pl.pallas_call(
        functools.partial(_pe_add_dropout_bits_kernel, p=p),
        out_shape=out_shape,
        grid_spec=pltpu.PrefetchScalarGridSpec(
            num_scalar_prefetch=0, grid=grid,
            in_specs=[x_spec, pe_spec, bits_spec], out_specs=o_spec),
        compiler_params=cparams,
        input_output_aliases={0: 0},
    )(x, pe_table, bits)


# ---------------------------------------------------------------------------
# Demo / self-check
# ---------------------------------------------------------------------------

if __name__ == "__main__":
    d_model = 32
    seq_len = 8
    batch = 2
    max_len = 64       # same construction as the module's default (5000), smaller table

    key = jax.random.PRNGKey(0)
    x = jax.random.normal(key, (seq_len, batch, d_model), dtype=jnp.float32)
    pe_table = make_positional_encoding_table(d_model, max_len=max_len, dtype=x.dtype)

    # Pure-JAX reference (eval mode: dropout == identity).
    ref = x + pe_table[:seq_len]

    # Eval-mode forward.
    out = positional_encoding(x, pe_table, p=0.1, training=False)
    out = jax.block_until_ready(out)
    assert out.shape == (seq_len, batch, d_model)
    assert jnp.allclose(out, ref, atol=1e-6), "eval-mode mismatch vs reference"

    # Training-mode forward (dropout active): kept elements must equal
    # (x + pe) / (1 - p).
    p = 0.1
    out_tr = positional_encoding(x, pe_table, p=p, training=True, seed=123)
    out_tr = jax.block_until_ready(out_tr)
    assert out_tr.shape == (seq_len, batch, d_model)
    keep_mask = out_tr != 0.0          # test-only heuristic (exact zeros of x+pe count as dropped)
    scaled_ref = ref * jnp.float32(1.0 / (1.0 - p))
    assert jnp.allclose(jnp.where(keep_mask, out_tr, 0.0),
                        jnp.where(keep_mask, scaled_ref, 0.0), atol=1e-5), \
        "training-mode kept values mismatch"
    drop_frac = 1.0 - jnp.mean(keep_mask.astype(jnp.float32))
    assert drop_frac < 0.5, f"dropout rate implausible for p={p}: {drop_frac}"

    print("KERNEL_OK")
</pallas_src>

<mosaic_0001>
module attributes {stable_mosaic.version = 11 : i64} {
  func.func @_pe_add_kernel(%arg0: i32, %arg1: memref<8x2x32xf32, #tpu.memory_space<vmem>>, %arg2: memref<8x1x32xf32, #tpu.memory_space<vmem>>, %arg3: memref<8x2x32xf32, #tpu.memory_space<vmem>>) attributes {dimension_semantics = [#tpu.dimension_semantics<parallel>], iteration_bounds = array<i64: 1>, scalar_prefetch = 0 : i64, scratch_operands = 0 : i64, tpu.core_type = #tpu.core_type<tc>, window_params = [{transform_indices = @transform_0, window_bounds = array<i64: 8, 2, 32>}, {transform_indices = @transform_1, window_bounds = array<i64: 8, 1, 32>}, {transform_indices = @transform_2, window_bounds = array<i64: 8, 2, 32>}]} {
    %c0 = arith.constant 0 : index
    %c0_0 = arith.constant 0 : index
    %c0_1 = arith.constant 0 : index
    %0 = vector.load %arg1[%c0, %c0_0, %c0_1] : memref<8x2x32xf32, #tpu.memory_space<vmem>>, vector<8x2x32xf32>
    %c0_2 = arith.constant 0 : index
    %c0_3 = arith.constant 0 : index
    %c0_4 = arith.constant 0 : index
    %1 = vector.load %arg2[%c0_2, %c0_3, %c0_4] : memref<8x1x32xf32, #tpu.memory_space<vmem>>, vector<8x1x32xf32>
    %2 = vector.broadcast %1 : vector<8x1x32xf32> to vector<8x2x32xf32>
    %3 = arith.addf %0, %2 : vector<8x2x32xf32>
    %c0_5 = arith.constant 0 : index
    %c0_6 = arith.constant 0 : index
    %c0_7 = arith.constant 0 : index
    %4 = vector.load %arg3[%c0_5, %c0_6, %c0_7] : memref<8x2x32xf32, #tpu.memory_space<vmem>>, vector<8x2x32xf32>
    tpu.vector_store %arg3[%c0_5, %c0_6, %c0_7], %3 {strides = array<i32>} : memref<8x2x32xf32, #tpu.memory_space<vmem>>, vector<8x2x32xf32>,
    return
  }
  func.func @transform_0(%arg0: i32) -> (i32, i32, i32) {
    %c0_i32 = arith.constant 0 : i32
    %c0_i32_0 = arith.constant 0 : i32
    %c0_i32_1 = arith.constant 0 : i32
    return %arg0, %c0_i32, %c0_i32_0 : i32, i32, i32
  }
  func.func @transform_1(%arg0: i32) -> (i32, i32, i32) {
    %c0_i32 = arith.constant 0 : i32
    %c0_i32_0 = arith.constant 0 : i32
    %c0_i32_1 = arith.constant 0 : i32
    return %arg0, %c0_i32, %c0_i32_0 : i32, i32, i32
  }
  func.func @transform_2(%arg0: i32) -> (i32, i32, i32) {
    %c0_i32 = arith.constant 0 : i32
    %c0_i32_0 = arith.constant 0 : i32
    %c0_i32_1 = arith.constant 0 : i32
    return %arg0, %c0_i32, %c0_i32_0 : i32, i32, i32
  }
}

</mosaic_0001>

<bundles_post_ra>
// kernel: tpu_custom_call.1
= control target key start
LH: loop header
LB: loop body
LE: loop exit
PB: predicated region body
PF: predicated region fallthrough
CT: control target
= control target key end

     0   :  { %7 = vsyncpa [#allocation3], 0  ;;  %s238_s0 = inlined_call_operand.hbm [shape: f32[8,2,32], index: 0, kind: input, shape index: {}, may-alias: {0,2}]   ;;  %s239_s1 = inlined_call_operand.vmem [shape: f32[64,1,32], index: 1, kind: input, shape index: {}]   ;;  %s240_s2 = inlined_call_operand.hbm [shape: f32[8,2,32], index: 2, kind: output, shape index: {}, may-alias: {0,2}]  }
   0x1   :  { %8 = vsyncpa [#allocation4], 0  ;;  %s13_s11 = sshll.u32 %s238_s0, 4  ;;  %s168_s12 = smov [#allocation2]   ;;  %s14_s11 = int_to_ptr.hbm [resolvable:$true] %s13_s11 }
   0x2   :  { %s15_s13 = sshll.u32 %s168_s12, 4  ;;  %s169_s14 = smov 32   ;;  %s16_s13 = int_to_ptr.vmem [resolvable:$true] %s15_s13 }
   0x3   :  { %s170_s15 = smov 2  }
   0x4   :  { %21 = dma.hbm_to_vmem [thread:$0]  %s14_s11, 256, %s16_s13, [#allocation3], %s169_s14, %s169_s14, %s170_s15  }
   0x5   :  { %164 = dma.done.wait [#allocation3], 256  }
   0x6   :  { %165 = vsyncadd [#allocation3], 4294967040  ;;  %vm76_vm0 = vcmask 254976   ;;  %s171_s16 = smov [#allocation5]   ;;  %s91_s0 = sshll.u32 %s240_s2, 4  ;;  %s92_s0 = int_to_ptr.hbm [resolvable:$true] %s91_s0 }
   0x7   :  { %s193_s17 = sshll.u32 %s171_s16, 4  ;;  %v28_v0 = vld [vmem:[#allocation2] sm:$0x3]  ;;  %v29_v2 = vld [vmem:[#allocation2 + $0x2] sm:$0x3]  ;;  %s90_s17 = int_to_ptr.vmem [resolvable:$true] %s193_s17 }
   0x8   :  { %v108_v1 = vld [vmem:[%s239_s1] ss:$0 sm:$0xff]  ;;  %v109_v3 = vld [vmem:[%s239_s1 + $0x1] ss:$0 sm:$0xff]  ;;  %v30_v5 = vld [vmem:[#allocation2 + $0x4] sm:$0x3] }
   0x9   :  { %v68_v4 = vadd.f32 %v108_v1, %v28_v0  ;;  %v110_v6 = vld [vmem:[%s239_s1 + $0x2] ss:$0 sm:$0xff]  ;;  %v69_v7 = vadd.f32 %v109_v3, %v29_v2  ;;  %v31_v8 = vld [vmem:[#allocation2 + $0x6] sm:$0x3]  ;;  %v111_v9 = vld [vmem:[%s239_s1 + $0x3] ss:$0 sm:$0xff] }
   0xa   :  { %v70_v10 = vadd.f32 %v110_v6, %v30_v5  ;;  %v32_v11 = vld [vmem:[#allocation2 + $0x8] sm:$0x3]  ;;  %v71_v12 = vadd.f32 %v111_v9, %v31_v8  ;;  %v112_v13 = vld [vmem:[%s239_s1 + $0x4] ss:$0 sm:$0xff]  ;;  %v33_v14 = vld [vmem:[#allocation2 + $0xa] sm:$0x3] }
   0xb   :  { %77 = vst.msk [vmem:[#allocation5] sm:$0x3] %vm76_vm0, %v68_v4  ;;  %v113_v15 = vld [vmem:[%s239_s1 + $0x5] ss:$0 sm:$0xff]  ;;  %v72_v16 = vadd.f32 %v112_v13, %v32_v11  ;;  %v34_v17 = vld [vmem:[#allocation2 + $0xc] sm:$0x3] }
   0xc   :  { %78 = vst.msk [vmem:[#allocation5 + $0x2] sm:$0x3] %vm76_vm0, %v69_v7  ;;  %v73_v18 = vadd.f32 %v113_v15, %v33_v14  ;;  %v114_v19 = vld [vmem:[%s239_s1 + $0x6] ss:$0 sm:$0xff]  ;;  %v35_v20 = vld [vmem:[#allocation2 + $0xe] sm:$0x3] }
   0xd   :  { %79 = vst.msk [vmem:[#allocation5 + $0x4] sm:$0x3] %vm76_vm0, %v70_v10  ;;  %v115_v21 = vld [vmem:[%s239_s1 + $0x7] ss:$0 sm:$0xff]  ;;  %v74_v22 = vadd.f32 %v114_v19, %v34_v17 }
   0xe   :  { %80 = vst.msk [vmem:[#allocation5 + $0x6] sm:$0x3] %vm76_vm0, %v71_v12  ;;  %v75_v23 = vadd.f32 %v115_v21, %v35_v20 }
   0xf   :  { %81 = vst.msk [vmem:[#allocation5 + $0x8] sm:$0x3] %vm76_vm0, %v72_v16 }
  0x10   :  { %82 = vst.msk [vmem:[#allocation5 + $0xa] sm:$0x3] %vm76_vm0, %v73_v18 }
  0x11   :  { %83 = vst.msk [vmem:[#allocation5 + $0xc] sm:$0x3] %vm76_vm0, %v74_v22 }
  0x12   :  { %84 = vst.msk [vmem:[#allocation5 + $0xe] sm:$0x3] %vm76_vm0, %v75_v23 }
  0x13   :  { %97 = dma.vmem_to_hbm [thread:$0]  %s90_s17, 256, %s92_s0, [#allocation4], %s169_s14, %s169_s14, %s170_s15  }
  0x14   :  { %166 = dma.done.wait [#allocation4], 256  }
  0x15   :  { %167 = vsyncadd [#allocation4], 4294967040 }
  0x16   :  { %102 = vsyncpa [#allocation3], 1 }
  0x17   :  { %103 = vsyncpa [#allocation4], 1 }

</bundles_post_ra>
